<compile_context>
chip_gen: v7x
topology: tpu7x:2x2x1
jax: 0.10.0
libtpu: 0.0.40
codegen_flags: <defaults>
</compile_context>

<pallas_src>
import jax
import jax.numpy as jnp
from jax import lax
from jax.experimental import pallas as pl
from jax.experimental.pallas import tpu as pltpu


def simple_model_forward(x, weight, bias, *, tile_b=None):
    """Equivalent of SimpleModel.forward: sum(Linear(x)) as a scalar loss.

    x:      [batch, size] float
    weight: [4, size]     float (PyTorch Linear convention)
    bias:   [4]           float
    returns scalar float32 loss
    """
    batch, size = x.shape
    x = x.astype(jnp.float32)

    # Per-feature column sums of the weight: (1, size), lane-dense.
    # Replaces the transposed, lane-sparse [size, 4] matmul operand.
    w_colsum = jnp.sum(weight.astype(jnp.float32), axis=0).reshape(1, size)

    # Batch tile: ~2 MiB per buffer so double-buffering fits every generation's
    # scoped-VMEM default; rows are a multiple of 8 sublanes, feature dim is full.
    if tile_b is None:
        tile_b = (2 * 1024 * 1024) // (size * 4)
        tile_b = max(8, min(1024, tile_b))
    if tile_b >= batch:
        tile_b = batch                          # single full-extent block
    else:
        tile_b = max(8, (tile_b // 8) * 8)      # multiple of 8 sublanes
    num_tiles = pl.cdiv(batch, tile_b)
    needs_mask = (batch % tile_b) != 0          # ragged final tile?

    def kernel(x_ref, w_ref, out_ref, acc_ref):
        i = pl.program_id(0)

        @pl.when(i == 0)
        def _init():
            acc_ref[...] = jnp.zeros_like(acc_ref)

        xv = x_ref[...]
        if needs_mask:
            # Zero out rows past the true batch size so the unspecified
            # out-of-bounds data of the last partial tile never reaches the sum.
            row = i * tile_b + lax.broadcasted_iota(jnp.int32, (tile_b, size), 0)
            xv = jnp.where(row < batch, xv, 0.0)

        # Column-sum of the tile (sublane reduce), then lane-dense multiply with
        # the precomputed weight column sums and reduce -> (1, 1) partial.
        colsum = jnp.sum(xv, axis=0, keepdims=True)                       # (1, size)
        acc_ref[...] += jnp.sum(colsum * w_ref[...], axis=1, keepdims=True)

        @pl.when(i == pl.num_programs(0) - 1)
        def _finalize():
            out_ref[...] = acc_ref[...]

    partial = pl.pallas_call(
        kernel,
        out_shape=jax.ShapeDtypeStruct((1, 1), jnp.float32),
        grid_spec=pltpu.PrefetchScalarGridSpec(
            num_scalar_prefetch=0,
            grid=(num_tiles,),
            in_specs=[
                pl.BlockSpec((tile_b, size), lambda i: (i, 0)),   # x batch tile
                pl.BlockSpec((1, size), lambda i: (0, 0)),        # weight colsum
            ],
            out_specs=pl.BlockSpec((1, 1), lambda i: (0, 0)),     # resident scalar
            scratch_shapes=[pltpu.VMEM((1, 1), jnp.float32)],     # f32 accumulator
        ),
        compiler_params=pltpu.CompilerParams(
            dimension_semantics=("arbitrary",)),                  # reduction axis
    )(x, w_colsum)

    # Bias folded in as a single scalar: batch * sum(bias).
    return partial[0, 0] + batch * jnp.sum(bias.astype(jnp.float32))


if __name__ == "__main__":
    # Small shapes implied by the module (Linear(size, 4) over a batch), sized to
    # exercise multi-tile accumulation while staying tiny.
    batch, size = 64, 128

    key = jax.random.PRNGKey(0)
    kx, kw, kb = jax.random.split(key, 3)

    # Deterministic init mimicking PyTorch's uniform(-1/sqrt(size), 1/sqrt(size)).
    bound = 1.0 / (size ** 0.5)
    weight = jax.random.uniform(kw, (4, size), jnp.float32, minval=-bound, maxval=bound)
    bias = jax.random.uniform(kb, (4,), jnp.float32, minval=-bound, maxval=bound)
    x = jax.random.normal(kx, (batch, size), jnp.float32)

    # Force several grid steps (4 tiles of 16 rows) to exercise the pipelined accumulator.
    loss = simple_model_forward(x, weight, bias, tile_b=16)
    jax.block_until_ready(loss)
    ref = jnp.sum(x @ weight.T + bias)
    assert jnp.allclose(loss, ref, rtol=1e-4, atol=1e-4), (loss, ref)

    # Ragged batch (not a multiple of the tile) exercises the tail-row masking path.
    x2 = x[:40]
    loss2 = simple_model_forward(x2, weight, bias, tile_b=16)
    jax.block_until_ready(loss2)
    ref2 = jnp.sum(x2 @ weight.T + bias)
    assert jnp.allclose(loss2, ref2, rtol=1e-4, atol=1e-4), (loss2, ref2)

    print("KERNEL_OK")
</pallas_src>

<mosaic_0001>
module attributes {stable_mosaic.version = 11 : i64} {
  func.func @kernel(%arg0: i32, %arg1: memref<16x128xf32, #tpu.memory_space<vmem>>, %arg2: memref<1x128xf32, #tpu.memory_space<vmem>>, %arg3: memref<1x1xf32, #tpu.memory_space<vmem>>, %arg4: memref<1x1xf32, #tpu.memory_space<vmem>>) attributes {dimension_semantics = [#tpu.dimension_semantics<arbitrary>], iteration_bounds = array<i64: 4>, scalar_prefetch = 0 : i64, scratch_operands = 1 : i64, tpu.core_type = #tpu.core_type<tc>, window_params = [{transform_indices = @transform_0, window_bounds = array<i64: 16, 128>}, {pipeline_mode = #tpu.pipeline_mode<synchronous>, transform_indices = @transform_1, window_bounds = array<i64: 1, 128>}, {pipeline_mode = #tpu.pipeline_mode<synchronous>, transform_indices = @transform_2, window_bounds = array<i64: 1, 1>}]} {
    %c0_i32 = arith.constant 0 : i32
    %0 = arith.cmpi eq, %arg0, %c0_i32 : i32
    %1 = arith.extui %0 : i1 to i32
    %c0_i32_0 = arith.constant 0 : i32
    %2 = arith.cmpi ne, %1, %c0_i32_0 : i32
    scf.if %2 {
      %cst_10 = arith.constant 0.000000e+00 : f32
      %16 = vector.broadcast %cst_10 : f32 to vector<1x1xf32>
      %c0_11 = arith.constant 0 : index
      %c0_12 = arith.constant 0 : index
      %17 = vector.load %arg4[%c0_11, %c0_12] : memref<1x1xf32, #tpu.memory_space<vmem>>, vector<1x1xf32>
      tpu.vector_store %arg4[%c0_11, %c0_12], %16 {strides = array<i32>} : memref<1x1xf32, #tpu.memory_space<vmem>>, vector<1x1xf32>,
    } else {
    }
    %c0 = arith.constant 0 : index
    %c0_1 = arith.constant 0 : index
    %3 = vector.load %arg1[%c0, %c0_1] : memref<16x128xf32, #tpu.memory_space<vmem>>, vector<16x128xf32>
    %cst = arith.constant dense<0.000000e+00> : vector<128xf32>
    %4 = vector.multi_reduction <add>, %3, %cst [0] : vector<16x128xf32> to vector<128xf32>
    %5 = vector.shape_cast %4 : vector<128xf32> to vector<1x128xf32>
    %c0_2 = arith.constant 0 : index
    %c0_3 = arith.constant 0 : index
    %6 = vector.load %arg4[%c0_2, %c0_3] : memref<1x1xf32, #tpu.memory_space<vmem>>, vector<1x1xf32>
    %c0_4 = arith.constant 0 : index
    %c0_5 = arith.constant 0 : index
    %7 = vector.load %arg2[%c0_4, %c0_5] : memref<1x128xf32, #tpu.memory_space<vmem>>, vector<1x128xf32>
    %8 = arith.mulf %5, %7 : vector<1x128xf32>
    %cst_6 = arith.constant dense<0.000000e+00> : vector<1xf32>
    %9 = vector.multi_reduction <add>, %8, %cst_6 [1] : vector<1x128xf32> to vector<1xf32>
    %10 = vector.shape_cast %9 : vector<1xf32> to vector<1x1xf32>
    %11 = arith.addf %6, %10 : vector<1x1xf32>
    %c0_7 = arith.constant 0 : index
    %c0_8 = arith.constant 0 : index
    %12 = vector.load %arg4[%c0_7, %c0_8] : memref<1x1xf32, #tpu.memory_space<vmem>>, vector<1x1xf32>
    tpu.vector_store %arg4[%c0_7, %c0_8], %11 {strides = array<i32>} : memref<1x1xf32, #tpu.memory_space<vmem>>, vector<1x1xf32>,
    %c3_i32 = arith.constant 3 : i32
    %13 = arith.cmpi eq, %arg0, %c3_i32 : i32
    %14 = arith.extui %13 : i1 to i32
    %c0_i32_9 = arith.constant 0 : i32
    %15 = arith.cmpi ne, %14, %c0_i32_9 : i32
    scf.if %15 {
      %c0_10 = arith.constant 0 : index
      %c0_11 = arith.constant 0 : index
      %16 = vector.load %arg4[%c0_10, %c0_11] : memref<1x1xf32, #tpu.memory_space<vmem>>, vector<1x1xf32>
      %c0_12 = arith.constant 0 : index
      %c0_13 = arith.constant 0 : index
      %17 = vector.load %arg3[%c0_12, %c0_13] : memref<1x1xf32, #tpu.memory_space<vmem>>, vector<1x1xf32>
      tpu.vector_store %arg3[%c0_12, %c0_13], %16 {strides = array<i32>} : memref<1x1xf32, #tpu.memory_space<vmem>>, vector<1x1xf32>,
    } else {
    }
    return
  }
  func.func @transform_0(%arg0: i32) -> (i32, i32) {
    %c0_i32 = arith.constant 0 : i32
    %c0_i32_0 = arith.constant 0 : i32
    return %arg0, %c0_i32 : i32, i32
  }
  func.func @transform_1(%arg0: i32) -> (i32, i32) {
    %c0_i32 = arith.constant 0 : i32
    %c0_i32_0 = arith.constant 0 : i32
    %c0_i32_1 = arith.constant 0 : i32
    return %c0_i32, %c0_i32_0 : i32, i32
  }
  func.func @transform_2(%arg0: i32) -> (i32, i32) {
    %c0_i32 = arith.constant 0 : i32
    %c0_i32_0 = arith.constant 0 : i32
    %c0_i32_1 = arith.constant 0 : i32
    return %c0_i32, %c0_i32_0 : i32, i32
  }
}

</mosaic_0001>

<bundles_post_ra>
// kernel: tpu_custom_call.1
= control target key start
LH: loop header
LB: loop body
LE: loop exit
PB: predicated region body
PF: predicated region fallthrough
CT: control target
= control target key end

     0   :  { %7 = vsyncpa [#allocation4], 0  ;;  %s550_s0 = inlined_call_operand.hbm [shape: f32[64,128], index: 0, kind: input, shape index: {}]   ;;  %s551_s1 = inlined_call_operand.vmem [shape: f32[1,128], index: 1, kind: input, shape index: {}]   ;;  %s552_s2 = inlined_call_operand.hbm [shape: f32[1,1], index: 2, kind: output, shape index: {}]  }
   0x1   :  { %9 = vsyncpa [#allocation4 + $0x1], 0 }
   0x2   :  { %10 = vsyncpa [#allocation5], 0  ;;  %s419_s9 = smov 0   ;;  %s421_s10 = smov 0  }
   0x3   :  { %s423_s11 = smov 0   ;;  %s425_s12 = smov 0  }
   0x4 LB: > { %s438_s13 = sadd.s32 4294967295, %s397_s12   ;;  %s441_s14 = sadd.s32 1, %s397_s12   ;;  %s397_s12 = sphi %s425_s12, %s559_s12   ;;  %s393_s11 = sphi %s423_s11, %s558_s11   ;;  %s389_s10 = sphi %s421_s10, %s557_s10   ;;  %s385_s9 = sphi %s419_s9, %s556_s9  }
   0x5   : > { %s20_s15 = ssub.s32 %s397_s12, %s441_s14  ;;  %s23_s16 = sadd.s32 1, %s393_s11 }
   0x6   : > { %p21_p0 = scmp.eq.s32.totalorder %s20_s15, 0  ;;  %p30_p1 = scmp.ne.s32.totalorder %s393_s11, %s389_s10 }
   0x7   : > { %p31_p2 = scmp.eq.s32.totalorder %s397_s12, 0  ;;  %p36_p3 = scmp.ne.s32.totalorder %s389_s10, %s385_s9 }
   0x8   : > { %s451_s17 = scalar_select %p21_p0, %s393_s11, %s23_s16  }
   0x9   : > { %p32_p4 = por %p31_p2, %p30_p1  ;;  %p37_p5 = scmp.eq.s32.totalorder %s438_s13, 0 }
   0xa   : > { %p264_p6 = scmp.lt.s32.totalorder %s397_s12, 4  ;;  %s105_s19 = sand.u32 1, %s393_s11  }
   0xb   : > { %p455_p7 = por %p37_p5, %p36_p3  ;;  %s242_s20 = sshll.u32 %s105_s19, 4 }
   0xc   : > { %s253_s21 = sshll.u32 %s397_s12, 8  ;;  %s109_s25 = scalar_lea.vmem [#allocation3], %s242_s20 }
   0xd   : > { %s464_s24 = scalar_lea.hbm %s550_s0, %s253_s21  ;;  %s116_s26 = sshll.u32 %s109_s25, 4  ;;  %s466_s26 = int_to_ptr.vmem [resolvable:$true] %s116_s26 }
   0xe   : > { %p468_p8 = pnand %p264_p6, %p32_p4  ;;  %s473_s28 = scalar_lea.sflag [#allocation4], %s105_s19 }
   0xf   : > { %s303_s29 = scalar_lea.hbm %s464_s24, 256  ;;  %s308_s4 = scalar_lea.hbm %s550_s0, 1024 }
  0x10   : > { %p304_p10 = scmp.ne.s32.totalorder %s464_s24, %s303_s29  ;;  %p305_p11 = pneg %p468_p8 }
  0x11   : > { %p309_p0 = scmp.lt.u32.totalorder %s464_s24, %s550_s0  ;;  %p310_p1 = scmp.lt.u32.totalorder %s308_s4, %s303_s29 }
  0x12   : > { %p306_p12 = pnand %p305_p11, %p304_p10  ;;  %p312_p3 = scmp.lt.u32.totalorder %s303_s29, %s464_s24 }
  0x13   : > { %p311_p2 = por %p310_p1, %p309_p0 }
  0x14   : > { %p307_p13 = pneg %p306_p12 }
  0x15   : > { %p313_p4 = por %p312_p3, %p311_p2 }
  0x17   : > { %p314_p5 = pnand %p313_p4, %p307_p13 }
  0x19   : > { %317 = shalt.err (!%p314_p5)
}
  0x1a   : > { %s318_s7 = scalar_lea.vmem %s466_s26, 256  ;;  %s399_s8 = smov [#allocation3]  }
  0x1b   : > { %p319_p6 = scmp.ne.s32.totalorder %s466_s26, %s318_s7  ;;  %s323_s9 = sshll.u32 %s399_s8, 4  ;;  %s324_s9 = int_to_ptr.vmem [resolvable:$false] %s323_s9 }
  0x1c   : > { %s325_s15 = scalar_lea.vmem %s324_s9, 512  ;;  %p326_p9 = scmp.lt.s32.totalorder %s466_s26, %s324_s9 }
  0x1d   : > { %p321_p10 = pnand %p319_p6, %p305_p11  ;;  %p327_p0 = scmp.lt.s32.totalorder %s325_s15, %s318_s7 }
  0x1f   : > { %p322_p12 = pneg %p321_p10  ;;  %p328_p1 = por %p327_p0, %p326_p9 }
  0x21   : > { %p329_p2 = pnand %p328_p1, %p322_p12 }
  0x23   : > { %332 = shalt.err (!%p329_p2)
}
  0x24   : > { %s400_s16 = smov 128   ;;  %s401_s19 = smov 8  }
  0x25   : > { %263 = dma.hbm_to_vmem [thread:$0]  (!%p468_p8), %s464_s24, 256, %s466_s26, %s473_s28, %s400_s16, %s400_s16, %s401_s19  }
  0x26   : > { %p124_p11 = scmp.lt.s32.totalorder %s397_s12, 5  ;;  %p555_p13 = scmp.ge.s32.totalorder %s397_s12, 1 }
  0x28   : > { %p125_p3 = pnand %p555_p13, %p124_p11 }
  0x29   : > { %s130_s20 = sand.u32 (!%p125_p3), 1, %s389_s10  }
  0x2a   : > { %128 = sbr.rel (%p125_p3) target bundleno = 255 (0xff), region = 28  ;;  %s246_s21 = sshll.u32 (!%p125_p3), %s130_s20, 4 }
  0x2b   : > { %s131_s22 = scalar_lea.sflag (!%p125_p3), [#allocation4], %s130_s20  ;;  %s134_s23 = scalar_lea.vmem (!%p125_p3), [#allocation3], %s246_s21 }
  0x31   : > { %376 = dma.done.wait (%p455_p7), %s131_s22, 256  }
  0x32   : > { %378 = vsyncadd (%p455_p7), %s131_s22, 4294967040  ;;  %p247_p9 = scmp.ne.s32.totalorder %s438_s13, 0 }
  0x33   : > { %vm155_vm0 = vcmask (!%p247_p9), 0   ;;  %v402_v0 = vmov (!%p247_p9), 0.0  }
  0x34   : > { %154 = sbr.rel (%p247_p9) target bundleno = 59 (0x3b), region = 36  ;;  %156 = vst.msk [vmem:[#allocation2] sm:$0x1] (!%p247_p9), %vm155_vm0, %v402_v0 }
  0x3b PF: > { %v157_v1 = vld [vmem:[%s134_s23] sm:$0xff]  ;;  %v158_v2 = vld [vmem:[%s134_s23 + $0x8] sm:$0xff]  ;;  %vm169_vm1 = vcmask 1040384   ;;  %vm174_vm2 = vcmask 0   ;;  %p248_p7 = scmp.ne.s32.totalorder %s438_s13, 3 }
  0x3c   : > { %v159_v3 = vadd.f32 %v158_v2, %v157_v1  ;;  %v167_v9 = vld [vmem:[%s551_s1] sm:$0x1] }
  0x3d   : > { %v166_v13 = vld [vmem:[#allocation2] sm:$0x1] }
  0x3e   : > { %v160_v4 = vrot.slane %v159_v3, 4 }
  0x40   : > { %v161_v5 = vadd.f32 %v160_v4, %v159_v3 }
  0x42   : > { %v162_v6 = vrot.slane %v161_v5, 2 }
  0x44   : > { %v163_v7 = vadd.f32 %v162_v6, %v161_v5 }
  0x46   : > { %v164_v8 = vrot.slane %v163_v7, 1 }
  0x48   : > { %v165_v10 = vadd.f32 %v164_v8, %v163_v7 }
  0x4a   : > { %v168_v11 = vmul.f32 %v167_v9, %v165_v10 }
  0x4c   : > { %v170_v12 = vsel %vm169_vm1, %v168_v11, 0.0 }
  0x4d   : > { %171 = vadd.xlane.f32.xlu0 %v170_v12 }
  0xd7   : > { %179 = sbr.rel (%p248_p7) target bundleno = 230 (0xe6), region = 40 }
  0xda   : > { %v172_v14 = vpop.xlane.xlu0 %171 }
  0xdb   : > { %v173_v15 = vadd.f32 %v172_v14, %v166_v13 }
  0xdd   : > { %175 = vst.msk [vmem:[#allocation2] sm:$0x1] %vm174_vm2, %v173_v15 }
  0xe4   : > { %v180_v16 = vld [vmem:[#allocation2] sm:$0x1] }
  0xe5   : > { %181 = vst.msk [vmem:[#allocation6] sm:$0x1] %vm174_vm2, %v180_v16 }
  0xe6 PF: > { %p265_p8 = scmp.eq.s32.totalorder %s438_s13, 3  ;;  %s403_s18 = smov [#allocation6]  }
  0xe7   : > { %s189_s25 = sshll.u32 %s403_s18, 4  ;;  %s190_s25 = int_to_ptr.vmem [resolvable:$true] %s189_s25 }
  0xe8   : > { %s333_s26 = scalar_lea.vmem %s190_s25, 16  ;;  %s339_s27 = scalar_lea.vmem %s190_s25, 32 }
  0xe9   : > { %p334_p4 = scmp.ne.s32.totalorder %s190_s25, %s333_s26  ;;  %p340_p10 = scmp.lt.s32.totalorder %s190_s25, %s190_s25 }
  0xea   : > { %p341_p12 = scmp.lt.s32.totalorder %s339_s27, %s333_s26 }
  0xeb   : > { %p335_p5 = pnand %p334_p4, %p265_p8 }
  0xec   : > { %p342_p0 = por %p341_p12, %p340_p10 }
  0xed   : > { %p336_p6 = pneg %p335_p5 }
  0xef   : > { %p343_p1 = pnand %p342_p0, %p336_p6 }
  0xf1   : > { %346 = shalt.err (!%p343_p1)
}
  0xf2   : > { %s347_s30 = scalar_lea.hbm %s552_s2, 16 }
  0xf3   : > { %p348_p2 = scmp.ne.s32.totalorder %s552_s2, %s347_s30  ;;  %p353_p3 = scmp.lt.u32.totalorder %s347_s30, %s552_s2 }
  0xf5   : > { %p349_p11 = pnand %p348_p2, %p265_p8 }
  0xf7   : > { %p350_p13 = pneg %p349_p11 }
  0xf9   : > { %p355_p9 = pnand %p353_p3, %p350_p13 }
  0xfb   : > { %358 = shalt.err (!%p355_p9)
}
  0xfc   : > { %257 = dma.vmem_to_hbm [thread:$0]  (%p265_p8), %s190_s25, 16, %s552_s2, [#allocation5]  }
  0xfd   : > { %380 = dma.done.wait (%p265_p8), [#allocation5], 16  }
  0xfe   : > { %382 = vsyncadd (%p265_p8), [#allocation5], 4294967280 }
  0xff PF: > { %p13_p7 = scmp.ge.s32.totalorder %s441_s14, 6   ;;  %s556_s9 = smov %s389_s10 }
 0x100   : > { %s557_s10 = smov %s393_s11  ;;  %s558_s11 = smov %s451_s17 }
 0x101   : > { %s559_s12 = smov %s441_s14  ;;  %15 = sbr.rel (!%p13_p7) target bundleno = 4 (0x4), region = 73 }
 0x108   :  { %202 = vsyncpa [#allocation4], 1 }
 0x109   :  { %204 = vsyncpa [#allocation4 + $0x1], 1 }
 0x10a   :  { %205 = vsyncpa [#allocation5], 1 }
 0x10b   :  { %207 = vsyncpa [#allocation5 + $0x1], 1 }

</bundles_post_ra>
